<compile_context>
chip_gen: v5e
topology: v5e:2x2
jax: 0.10.0
libtpu: 0.0.40
codegen_flags: <defaults>
</compile_context>

<pallas_src>
import functools

import jax
import jax.numpy as jnp
from jax import lax
from jax.experimental import pallas as pl
from jax.experimental.pallas import tpu as pltpu


def _round_up(x, m):
    return (x + m - 1) // m * m


def _elu(x):
    # ELU(alpha=1); clamp so the discarded where-branch never evaluates exp(+big).
    return jnp.where(x > 0, x, jnp.exp(jnp.minimum(x, 0.0)) - 1.0)


# ----------------------------------------------------------------------------
# Fused Pallas kernel: (batch block, neuron block) grid
# ----------------------------------------------------------------------------

def _encoder_fused_kernel(x_ref, w_ref, bconv_ref, spT_ref, featT_ref, bro_ref,
                          o_ref, core_ref, *, TB, H, Wp, offset):
    """Shapes seen per grid step (bi, nj):

      x_ref:     (TB, Cin_p, Lflat)   zero-padded inputs, spatially flattened
      w_ref:     (Cout_p, 9*Cin_p)    conv taps, column = (di*3+dj)*Cin_p + cin
      bconv_ref: (Cout_p, 1)          conv bias (f32)
      spT_ref:   (LW, TN)             spatial readout weights^T (zeros at pad cols)
      featT_ref: (Cout_p, TN)         feature readout weights^T (f32)
      bro_ref:   (1, TN)              readout bias (f32)
      o_ref:     (TB, TN)             output tile (lane-dense)
      core_ref:  (TB*Cout_p, LW)      VMEM scratch: ELU(core), cached across nj
    """
    LW = H * Wp
    cout_p = w_ref.shape[0]
    nj = pl.program_id(1)

    # --- core: 3x3 SAME conv as ONE fused K=9*Cin_p matmul per batch element.
    # Only computed on the first neuron tile; reused from scratch for nj > 0.
    @pl.when(nj == 0)
    def _():
        w2 = w_ref[...]
        bconv = bconv_ref[...]
        for b in range(TB):
            xb = x_ref[b]                                      # (Cin_p, Lflat)
            taps = []
            for k in range(9):
                di, dj = divmod(k, 3)
                off = di * Wp + dj
                taps.append(xb[:, off:off + LW])               # (Cin_p, LW)
            patches = jnp.concatenate(taps, axis=0)            # (9*Cin_p, LW)
            acc = jnp.dot(w2, patches, preferred_element_type=jnp.float32)
            core_b = _elu(acc + bconv)                         # (Cout_p, LW) f32
            core_ref[b * cout_p:(b + 1) * cout_p, :] = core_b.astype(core_ref.dtype)

    # --- factorized readout: spatial contraction (M = TB*Cout_p) then a small
    #     feature-weighted sublane reduction.  feature (x) spatial weights are
    #     never materialized.
    s = jnp.dot(core_ref[...], spT_ref[...],
                preferred_element_type=jnp.float32)            # (TB*Cout_p, TN)
    tn = s.shape[1]
    s = s.reshape(TB, cout_p, tn)
    ro = jnp.sum(s * featT_ref[...][None, :, :], axis=1)       # (TB, TN)

    # --- Encoder epilogue: elu(x + offset) + 1 ------------------------------
    y = ro + bro_ref[...] + offset
    o_ref[...] = (_elu(y) + 1.0).astype(o_ref.dtype)


# ----------------------------------------------------------------------------
# One-time parameter prep (hoisted out of the per-call path)
# ----------------------------------------------------------------------------

def prepare_encoder_params(params, H, W, *, compute_dtype=jnp.bfloat16,
                           tn_max=512):
    conv_w = jnp.asarray(params["conv_w"])
    conv_b = jnp.asarray(params["conv_b"])
    spatial_w = jnp.asarray(params["spatial_w"])
    feature_w = jnp.asarray(params["feature_w"])
    readout_b = jnp.asarray(params["readout_b"])

    Cout, Cin, kh, kw = conv_w.shape
    N = feature_w.shape[0]
    assert (kh, kw) == (3, 3), "core assumes a 3x3 kernel"
    assert spatial_w.shape == (N, H * W)

    Cin_p = _round_up(Cin, 8)
    Cout_p = _round_up(Cout, 8)
    Npad = _round_up(N, 128)
    if Npad > tn_max:                       # keep TN an exact divisor of Npad
        Npad = _round_up(N, tn_max)
    TN = min(Npad, tn_max)
    Wp = W + 2
    LW = H * Wp

    # Conv taps as a single (Cout_p, 9*Cin_p) matrix; column = (di*3+dj)*Cin_p + c
    w = jnp.pad(conv_w, ((0, Cout_p - Cout), (0, Cin_p - Cin), (0, 0), (0, 0)))
    w2 = jnp.transpose(w, (0, 2, 3, 1)).reshape(Cout_p, 9 * Cin_p).astype(compute_dtype)
    bconv = jnp.pad(conv_b, (0, Cout_p - Cout)).reshape(Cout_p, 1).astype(jnp.float32)

    # Spatial readout weights^T; zero rows at the 2 junk padded columns per row.
    sp = spatial_w.reshape(N, H, W)
    sp = jnp.pad(sp, ((0, Npad - N), (0, 0), (0, 2))).reshape(Npad, LW)
    spT = jnp.transpose(sp, (1, 0)).astype(compute_dtype)               # (LW, Npad)

    featT = jnp.transpose(
        jnp.pad(feature_w, ((0, Npad - N), (0, Cout_p - Cout))), (1, 0)
    ).astype(jnp.float32)                                               # (Cout_p, Npad)
    bro = jnp.pad(readout_b, (0, Npad - N)).reshape(1, Npad).astype(jnp.float32)

    return dict(w2=w2, bconv=bconv, spT=spT, featT=featT, bro=bro,
                dims=dict(Cin=Cin, Cin_p=Cin_p, Cout_p=Cout_p, N=N, Npad=Npad,
                          TN=TN, H=H, W=W, Wp=Wp, LW=LW),
                compute_dtype=compute_dtype)


# ----------------------------------------------------------------------------
# Forward wrapper
# ----------------------------------------------------------------------------

def encoder_forward(x, prep, elu_offset, *, max_tb=32):
    d = prep["dims"]
    compute_dtype = prep["compute_dtype"]
    B, Cin, H, W = x.shape
    assert (Cin, H, W) == (d["Cin"], d["H"], d["W"])
    Cin_p, Cout_p = d["Cin_p"], d["Cout_p"]
    N, Npad, TN = d["N"], d["Npad"], d["TN"]
    Wp, LW = d["Wp"], d["LW"]
    Lflat = (H + 3) * Wp

    # Batch tile: fill MXU output rows (TB*Cout_p) and amortize grid overhead.
    # TB is either the full (padded) batch or a multiple of 8 (lane-dense out).
    # TODO(synk): on v7x prefer an even number of batch steps so both
    # TensorCores get work ("parallel" shards this axis across cores).
    TB = B if B <= max_tb else max(8, (max_tb // 8) * 8)
    B_pad = _round_up(B, TB)

    # Per-call input prep: SAME halo + channel/batch zero padding, W-flatten.
    x_p = jnp.pad(x, ((0, B_pad - B), (0, Cin_p - Cin), (1, 2), (1, 1)))
    x_p = x_p.reshape(B_pad, Cin_p, Lflat).astype(compute_dtype)

    kernel = functools.partial(_encoder_fused_kernel, TB=TB, H=H, Wp=Wp,
                               offset=float(elu_offset))

    nb_b = B_pad // TB
    nb_n = Npad // TN

    flops = int(B_pad * (2 * Cout_p * 9 * Cin_p * LW
                         + 2 * Cout_p * LW * Npad
                         + 4 * Cout_p * Npad))
    transcendentals = int(B_pad * (Cout_p * LW + Npad))
    itemsz = jnp.dtype(compute_dtype).itemsize
    bytes_accessed = int(x_p.size * itemsz
                         + prep["w2"].size * itemsz
                         + prep["spT"].size * itemsz
                         + (prep["bconv"].size + prep["featT"].size
                            + prep["bro"].size) * 4
                         + B_pad * Npad * 4)

    out = pl.pallas_call(
        kernel,
        out_shape=jax.ShapeDtypeStruct((B_pad, Npad), jnp.float32),
        grid_spec=pltpu.PrefetchScalarGridSpec(
            num_scalar_prefetch=0,
            grid=(nb_b, nb_n),
            in_specs=[
                pl.BlockSpec((TB, Cin_p, Lflat), lambda bi, nj: (bi, 0, 0)),   # x
                pl.BlockSpec((Cout_p, 9 * Cin_p), lambda bi, nj: (0, 0)),      # conv w
                pl.BlockSpec((Cout_p, 1), lambda bi, nj: (0, 0)),              # conv b
                pl.BlockSpec((LW, TN), lambda bi, nj: (0, nj)),                # spatial^T
                pl.BlockSpec((Cout_p, TN), lambda bi, nj: (0, nj)),            # feature^T
                pl.BlockSpec((1, TN), lambda bi, nj: (0, nj)),                 # readout b
            ],
            out_specs=pl.BlockSpec((TB, TN), lambda bi, nj: (bi, nj)),
            scratch_shapes=[pltpu.VMEM((TB * Cout_p, LW), compute_dtype)],
        ),
        compiler_params=pltpu.CompilerParams(
            # batch axis parallel (megacore-shardable); neuron axis arbitrary
            # because the core scratch is carried across nj within a batch tile.
            dimension_semantics=("parallel", "arbitrary"),
            # <= ~48 MiB keeps v7x (64 MiB physical) safe; plenty on v5e/v6e.
            vmem_limit_bytes=48 * 1024 * 1024,
        ),
        cost_estimate=pl.CostEstimate(flops=flops,
                                      transcendentals=transcendentals,
                                      bytes_accessed=bytes_accessed),
    )(x_p, prep["w2"], prep["bconv"], prep["spT"], prep["featT"], prep["bro"])

    return out[:B, :N]


# ----------------------------------------------------------------------------
# Pure-JAX reference (true factorized readout)
# ----------------------------------------------------------------------------

def encoder_reference(x, params, elu_offset):
    conv = lax.conv_general_dilated(
        x, params["conv_w"], (1, 1), "SAME",
        dimension_numbers=("NCHW", "OIHW", "NCHW"))
    conv = conv + params["conv_b"][None, :, None, None]
    core = _elu(conv)
    B, C, H, W = core.shape
    ro = jnp.einsum("bcs,nc,ns->bn", core.reshape(B, C, H * W),
                    params["feature_w"], params["spatial_w"])
    ro = ro + params["readout_b"][None, :]
    return _elu(ro + elu_offset) + 1.0


# ----------------------------------------------------------------------------
# Main
# ----------------------------------------------------------------------------

if __name__ == "__main__":
    key = jax.random.PRNGKey(0)
    k1, k2, k3, k4, k5, kx = jax.random.split(key, 6)

    B, Cin, H, W = 2, 4, 16, 16
    Cout = 8          # core hidden channels
    N_NEURONS = 32    # readout outputs
    ELU_OFFSET = 0.5

    params = {
        "conv_w":    0.1 * jax.random.normal(k1, (Cout, Cin, 3, 3), jnp.float32),
        "conv_b":    0.1 * jax.random.normal(k2, (Cout,), jnp.float32),
        "spatial_w": 0.05 * jax.random.normal(k3, (N_NEURONS, H * W), jnp.float32),
        "feature_w": 0.1 * jax.random.normal(k4, (N_NEURONS, Cout), jnp.float32),
        "readout_b": 0.1 * jax.random.normal(k5, (N_NEURONS,), jnp.float32),
    }
    x = jax.random.normal(kx, (B, Cin, H, W), jnp.float32)

    ref = jax.block_until_ready(encoder_reference(x, params, ELU_OFFSET))

    # f32 MXU operands: strict check.
    prep_f32 = prepare_encoder_params(params, H, W, compute_dtype=jnp.float32)
    out_f32 = jax.block_until_ready(encoder_forward(x, prep_f32, ELU_OFFSET))
    assert out_f32.shape == (B, N_NEURONS), out_f32.shape
    assert jnp.allclose(out_f32, ref, atol=1e-4, rtol=1e-4), "f32 mismatch vs reference"

    # bf16 MXU operands (default, recommended on all gens), f32 accumulate.
    prep_bf16 = prepare_encoder_params(params, H, W)   # compute_dtype=bfloat16
    out_bf16 = jax.block_until_ready(encoder_forward(x, prep_bf16, ELU_OFFSET))
    assert out_bf16.shape == (B, N_NEURONS), out_bf16.shape
    assert jnp.allclose(out_bf16, ref, atol=5e-2, rtol=5e-2), "bf16 mismatch vs reference"

    print("KERNEL_OK")
</pallas_src>

<mosaic_0001>
module attributes {stable_mosaic.version = 11 : i64} {
  func.func @_encoder_fused_kernel(%arg0: i32, %arg1: i32, %arg2: memref<2x8x342xf32, #tpu.memory_space<vmem>>, %arg3: memref<8x72xf32, #tpu.memory_space<vmem>>, %arg4: memref<8x1xf32, #tpu.memory_space<vmem>>, %arg5: memref<288x128xf32, #tpu.memory_space<vmem>>, %arg6: memref<8x128xf32, #tpu.memory_space<vmem>>, %arg7: memref<1x128xf32, #tpu.memory_space<vmem>>, %arg8: memref<2x128xf32, #tpu.memory_space<vmem>>, %arg9: memref<16x288xf32, #tpu.memory_space<vmem>>) attributes {dimension_semantics = [#tpu.dimension_semantics<parallel>, #tpu.dimension_semantics<arbitrary>], iteration_bounds = array<i64: 1, 1>, scalar_prefetch = 0 : i64, scratch_operands = 1 : i64, tpu.core_type = #tpu.core_type<tc>, window_params = [{transform_indices = @transform_0, window_bounds = array<i64: 2, 8, 342>}, {pipeline_mode = #tpu.pipeline_mode<synchronous>, transform_indices = @transform_1, window_bounds = array<i64: 8, 72>}, {pipeline_mode = #tpu.pipeline_mode<synchronous>, transform_indices = @transform_2, window_bounds = array<i64: 8, 1>}, {transform_indices = @transform_3, window_bounds = array<i64: 288, 128>}, {transform_indices = @transform_4, window_bounds = array<i64: 8, 128>}, {transform_indices = @transform_5, window_bounds = array<i64: 1, 128>}, {transform_indices = @transform_6, window_bounds = array<i64: 2, 128>}]} {
    %c0_i32 = arith.constant 0 : i32
    %0 = arith.cmpi eq, %arg1, %c0_i32 : i32
    %1 = arith.extui %0 : i1 to i32
    %c0_i32_0 = arith.constant 0 : i32
    %2 = arith.cmpi ne, %1, %c0_i32_0 : i32
    scf.if %2 {
      %c0_16 = arith.constant 0 : index
      %c0_17 = arith.constant 0 : index
      %28 = vector.load %arg3[%c0_16, %c0_17] : memref<8x72xf32, #tpu.memory_space<vmem>>, vector<8x72xf32>
      %c0_18 = arith.constant 0 : index
      %c0_19 = arith.constant 0 : index
      %29 = vector.load %arg4[%c0_18, %c0_19] : memref<8x1xf32, #tpu.memory_space<vmem>>, vector<8x1xf32>
      %c0_20 = arith.constant 0 : index
      %c0_21 = arith.constant 0 : index
      %c0_22 = arith.constant 0 : index
      %30 = vector.load %arg2[%c0_20, %c0_21, %c0_22] : memref<2x8x342xf32, #tpu.memory_space<vmem>>, vector<1x8x342xf32>
      %31 = vector.shape_cast %30 : vector<1x8x342xf32> to vector<8x342xf32>
      %32 = vector.extract_strided_slice %31 {offsets = [0, 0], sizes = [8, 288], strides = [1, 1]} : vector<8x342xf32> to vector<8x288xf32>
      %33 = vector.extract_strided_slice %31 {offsets = [0, 1], sizes = [8, 288], strides = [1, 1]} : vector<8x342xf32> to vector<8x288xf32>
      %34 = vector.extract_strided_slice %31 {offsets = [0, 2], sizes = [8, 288], strides = [1, 1]} : vector<8x342xf32> to vector<8x288xf32>
      %35 = vector.extract_strided_slice %31 {offsets = [0, 18], sizes = [8, 288], strides = [1, 1]} : vector<8x342xf32> to vector<8x288xf32>
      %36 = vector.extract_strided_slice %31 {offsets = [0, 19], sizes = [8, 288], strides = [1, 1]} : vector<8x342xf32> to vector<8x288xf32>
      %37 = vector.extract_strided_slice %31 {offsets = [0, 20], sizes = [8, 288], strides = [1, 1]} : vector<8x342xf32> to vector<8x288xf32>
      %38 = vector.extract_strided_slice %31 {offsets = [0, 36], sizes = [8, 288], strides = [1, 1]} : vector<8x342xf32> to vector<8x288xf32>
      %39 = vector.extract_strided_slice %31 {offsets = [0, 37], sizes = [8, 288], strides = [1, 1]} : vector<8x342xf32> to vector<8x288xf32>
      %40 = vector.extract_strided_slice %31 {offsets = [0, 38], sizes = [8, 288], strides = [1, 1]} : vector<8x342xf32> to vector<8x288xf32>
      %41 = tpu.concatenate %32, %33, %34, %35, %36, %37, %38, %39, %40 in 0 : vector<8x288xf32>, vector<8x288xf32>, vector<8x288xf32>, vector<8x288xf32>, vector<8x288xf32>, vector<8x288xf32>, vector<8x288xf32>, vector<8x288xf32>, vector<8x288xf32> -> vector<72x288xf32>
      %cst_23 = arith.constant dense<0.000000e+00> : vector<8x288xf32>
      %42 = tpu.matmul %28, %41, %cst_23 {dimension_numbers = #tpu.dot_dimension_numbers<[1], [0], [0], [1], [0, 0, 1, 1], [], []>} : vector<8x72xf32>, vector<72x288xf32>, vector<8x288xf32> -> vector<8x288xf32>
      %43 = vector.broadcast %29 : vector<8x1xf32> to vector<8x288xf32>
      %44 = arith.addf %42, %43 : vector<8x288xf32>
      %cst_24 = arith.constant 0.000000e+00 : f32
      %45 = vector.broadcast %cst_24 : f32 to vector<8x288xf32>
      %46 = arith.cmpf ogt, %44, %45 : vector<8x288xf32>
      %cst_25 = arith.constant 0.000000e+00 : f32
      %47 = vector.broadcast %cst_25 : f32 to vector<8x288xf32>
      %48 = arith.minimumf %44, %47 : vector<8x288xf32>
      %49 = math.exp %48 : vector<8x288xf32>
      %cst_26 = arith.constant 1.000000e+00 : f32
      %50 = vector.broadcast %cst_26 : f32 to vector<8x288xf32>
      %51 = arith.subf %49, %50 : vector<8x288xf32>
      %52 = arith.select %46, %44, %51 : vector<8x288xi1>, vector<8x288xf32>
      %c0_27 = arith.constant 0 : index
      %c0_28 = arith.constant 0 : index
      %53 = vector.load %arg9[%c0_27, %c0_28] : memref<16x288xf32, #tpu.memory_space<vmem>>, vector<8x288xf32>
      tpu.vector_store %arg9[%c0_27, %c0_28], %52 {strides = array<i32>} : memref<16x288xf32, #tpu.memory_space<vmem>>, vector<8x288xf32>,
      %c1 = arith.constant 1 : index
      %c0_29 = arith.constant 0 : index
      %c0_30 = arith.constant 0 : index
      %54 = vector.load %arg2[%c1, %c0_29, %c0_30] : memref<2x8x342xf32, #tpu.memory_space<vmem>>, vector<1x8x342xf32>
      %55 = vector.shape_cast %54 : vector<1x8x342xf32> to vector<8x342xf32>
      %56 = vector.extract_strided_slice %55 {offsets = [0, 0], sizes = [8, 288], strides = [1, 1]} : vector<8x342xf32> to vector<8x288xf32>
      %57 = vector.extract_strided_slice %55 {offsets = [0, 1], sizes = [8, 288], strides = [1, 1]} : vector<8x342xf32> to vector<8x288xf32>
      %58 = vector.extract_strided_slice %55 {offsets = [0, 2], sizes = [8, 288], strides = [1, 1]} : vector<8x342xf32> to vector<8x288xf32>
      %59 = vector.extract_strided_slice %55 {offsets = [0, 18], sizes = [8, 288], strides = [1, 1]} : vector<8x342xf32> to vector<8x288xf32>
      %60 = vector.extract_strided_slice %55 {offsets = [0, 19], sizes = [8, 288], strides = [1, 1]} : vector<8x342xf32> to vector<8x288xf32>
      %61 = vector.extract_strided_slice %55 {offsets = [0, 20], sizes = [8, 288], strides = [1, 1]} : vector<8x342xf32> to vector<8x288xf32>
      %62 = vector.extract_strided_slice %55 {offsets = [0, 36], sizes = [8, 288], strides = [1, 1]} : vector<8x342xf32> to vector<8x288xf32>
      %63 = vector.extract_strided_slice %55 {offsets = [0, 37], sizes = [8, 288], strides = [1, 1]} : vector<8x342xf32> to vector<8x288xf32>
      %64 = vector.extract_strided_slice %55 {offsets = [0, 38], sizes = [8, 288], strides = [1, 1]} : vector<8x342xf32> to vector<8x288xf32>
      %65 = tpu.concatenate %56, %57, %58, %59, %60, %61, %62, %63, %64 in 0 : vector<8x288xf32>, vector<8x288xf32>, vector<8x288xf32>, vector<8x288xf32>, vector<8x288xf32>, vector<8x288xf32>, vector<8x288xf32>, vector<8x288xf32>, vector<8x288xf32> -> vector<72x288xf32>
      %cst_31 = arith.constant dense<0.000000e+00> : vector<8x288xf32>
      %66 = tpu.matmul %28, %65, %cst_31 {dimension_numbers = #tpu.dot_dimension_numbers<[1], [0], [0], [1], [0, 0, 1, 1], [], []>} : vector<8x72xf32>, vector<72x288xf32>, vector<8x288xf32> -> vector<8x288xf32>
      %67 = vector.broadcast %29 : vector<8x1xf32> to vector<8x288xf32>
      %68 = arith.addf %66, %67 : vector<8x288xf32>
      %cst_32 = arith.constant 0.000000e+00 : f32
      %69 = vector.broadcast %cst_32 : f32 to vector<8x288xf32>
      %70 = arith.cmpf ogt, %68, %69 : vector<8x288xf32>
      %cst_33 = arith.constant 0.000000e+00 : f32
      %71 = vector.broadcast %cst_33 : f32 to vector<8x288xf32>
      %72 = arith.minimumf %68, %71 : vector<8x288xf32>
      %73 = math.exp %72 : vector<8x288xf32>
      %cst_34 = arith.constant 1.000000e+00 : f32
      %74 = vector.broadcast %cst_34 : f32 to vector<8x288xf32>
      %75 = arith.subf %73, %74 : vector<8x288xf32>
      %76 = arith.select %70, %68, %75 : vector<8x288xi1>, vector<8x288xf32>
      %c8 = arith.constant 8 : index
      %c0_35 = arith.constant 0 : index
      %77 = vector.load %arg9[%c8, %c0_35] : memref<16x288xf32, #tpu.memory_space<vmem>>, vector<8x288xf32>
      tpu.vector_store %arg9[%c8, %c0_35], %76 {strides = array<i32>} : memref<16x288xf32, #tpu.memory_space<vmem>>, vector<8x288xf32>,
    } else {
    }
    %c0 = arith.constant 0 : index
    %c0_1 = arith.constant 0 : index
    %3 = vector.load %arg9[%c0, %c0_1] : memref<16x288xf32, #tpu.memory_space<vmem>>, vector<16x288xf32>
    %c0_2 = arith.constant 0 : index
    %c0_3 = arith.constant 0 : index
    %4 = vector.load %arg5[%c0_2, %c0_3] : memref<288x128xf32, #tpu.memory_space<vmem>>, vector<288x128xf32>
    %cst = arith.constant dense<0.000000e+00> : vector<16x128xf32>
    %5 = tpu.matmul %3, %4, %cst {dimension_numbers = #tpu.dot_dimension_numbers<[1], [0], [0], [1], [0, 0, 1, 1], [], []>} : vector<16x288xf32>, vector<288x128xf32>, vector<16x128xf32> -> vector<16x128xf32>
    %6 = vector.shape_cast %5 : vector<16x128xf32> to vector<2x8x128xf32>
    %c0_4 = arith.constant 0 : index
    %c0_5 = arith.constant 0 : index
    %7 = vector.load %arg6[%c0_4, %c0_5] : memref<8x128xf32, #tpu.memory_space<vmem>>, vector<8x128xf32>
    %8 = vector.shape_cast %7 : vector<8x128xf32> to vector<1x8x128xf32>
    %9 = vector.broadcast %8 : vector<1x8x128xf32> to vector<2x8x128xf32>
    %10 = arith.mulf %6, %9 : vector<2x8x128xf32>
    %cst_6 = arith.constant dense<0.000000e+00> : vector<2x128xf32>
    %11 = vector.multi_reduction <add>, %10, %cst_6 [1] : vector<2x8x128xf32> to vector<2x128xf32>
    %c0_7 = arith.constant 0 : index
    %c0_8 = arith.constant 0 : index
    %12 = vector.load %arg7[%c0_7, %c0_8] : memref<1x128xf32, #tpu.memory_space<vmem>>, vector<1x128xf32>
    %13 = vector.broadcast %12 : vector<1x128xf32> to vector<2x128xf32>
    %14 = arith.addf %11, %13 : vector<2x128xf32>
    %cst_9 = arith.constant 5.000000e-01 : f32
    %15 = vector.broadcast %cst_9 : f32 to vector<2x128xf32>
    %16 = arith.addf %14, %15 : vector<2x128xf32>
    %cst_10 = arith.constant 0.000000e+00 : f32
    %17 = vector.broadcast %cst_10 : f32 to vector<2x128xf32>
    %18 = arith.cmpf ogt, %16, %17 : vector<2x128xf32>
    %cst_11 = arith.constant 0.000000e+00 : f32
    %19 = vector.broadcast %cst_11 : f32 to vector<2x128xf32>
    %20 = arith.minimumf %16, %19 : vector<2x128xf32>
    %21 = math.exp %20 : vector<2x128xf32>
    %cst_12 = arith.constant 1.000000e+00 : f32
    %22 = vector.broadcast %cst_12 : f32 to vector<2x128xf32>
    %23 = arith.subf %21, %22 : vector<2x128xf32>
    %24 = arith.select %18, %16, %23 : vector<2x128xi1>, vector<2x128xf32>
    %cst_13 = arith.constant 1.000000e+00 : f32
    %25 = vector.broadcast %cst_13 : f32 to vector<2x128xf32>
    %26 = arith.addf %24, %25 : vector<2x128xf32>
    %c0_14 = arith.constant 0 : index
    %c0_15 = arith.constant 0 : index
    %27 = vector.load %arg8[%c0_14, %c0_15] : memref<2x128xf32, #tpu.memory_space<vmem>>, vector<2x128xf32>
    tpu.vector_store %arg8[%c0_14, %c0_15], %26 {strides = array<i32>} : memref<2x128xf32, #tpu.memory_space<vmem>>, vector<2x128xf32>,
    return
  }
  func.func @transform_0(%arg0: i32, %arg1: i32) -> (i32, i32, i32) {
    %c0_i32 = arith.constant 0 : i32
    %c0_i32_0 = arith.constant 0 : i32
    %c0_i32_1 = arith.constant 0 : i32
    return %arg0, %c0_i32, %c0_i32_0 : i32, i32, i32
  }
  func.func @transform_1(%arg0: i32, %arg1: i32) -> (i32, i32) {
    %c0_i32 = arith.constant 0 : i32
    %c0_i32_0 = arith.constant 0 : i32
    %c0_i32_1 = arith.constant 0 : i32
    return %c0_i32, %c0_i32_0 : i32, i32
  }
  func.func @transform_2(%arg0: i32, %arg1: i32) -> (i32, i32) {
    %c0_i32 = arith.constant 0 : i32
    %c0_i32_0 = arith.constant 0 : i32
    %c0_i32_1 = arith.constant 0 : i32
    return %c0_i32, %c0_i32_0 : i32, i32
  }
  func.func @transform_3(%arg0: i32, %arg1: i32) -> (i32, i32) {
    %c0_i32 = arith.constant 0 : i32
    %c0_i32_0 = arith.constant 0 : i32
    return %c0_i32, %arg1 : i32, i32
  }
  func.func @transform_4(%arg0: i32, %arg1: i32) -> (i32, i32) {
    %c0_i32 = arith.constant 0 : i32
    %c0_i32_0 = arith.constant 0 : i32
    return %c0_i32, %arg1 : i32, i32
  }
  func.func @transform_5(%arg0: i32, %arg1: i32) -> (i32, i32) {
    %c0_i32 = arith.constant 0 : i32
    %c0_i32_0 = arith.constant 0 : i32
    return %c0_i32, %arg1 : i32, i32
  }
  func.func @transform_6(%arg0: i32, %arg1: i32) -> (i32, i32) {
    %c0_i32 = arith.constant 0 : i32
    return %arg0, %arg1 : i32, i32
  }
}

</mosaic_0001>

<bundles_post_ra>
// kernel: tpu_custom_call.1
= control target key start
LH: loop header
LB: loop body
LE: loop exit
PB: predicated region body
PF: predicated region fallthrough
CT: control target
= control target key end

     0   :  { %11 = vsyncpa [#allocation4], 0  ;;  %s1129_s0 = inlined_call_operand.hbm [shape: f32[2,8,342], index: 0, kind: input, shape index: {}]   ;;  %s1130_s1 = inlined_call_operand.vmem [shape: f32[8,72], index: 1, kind: input, shape index: {}]   ;;  %s1131_s2 = inlined_call_operand.vmem [shape: f32[8,1], index: 2, kind: input, shape index: {}]   ;;  %s1132_s3 = inlined_call_operand.hbm [shape: f32[288,128], index: 3, kind: input, shape index: {}]   ;;  %s1133_s4 = inlined_call_operand.hbm [shape: f32[8,128], index: 4, kind: input, shape index: {}]   ;;  %s1134_s5 = inlined_call_operand.vmem [shape: f32[1,128], index: 5, kind: input, shape index: {}]   ;;  %s1135_s6 = inlined_call_operand.hbm [shape: f32[2,128], index: 6, kind: output, shape index: {}]  }
   0x1   :  { %12 = vsyncpa [#allocation7], 0  ;;  %s35_s23 = sshll.u32 %s1132_s3, 4  ;;  %s36_s23 = int_to_ptr.hbm [resolvable:$true] %s35_s23 }
   0x2   :  { %13 = vsyncpa [#allocation5], 0  ;;  %s878_s24 = smov [#allocation6]   ;;  %s18_s28 = sshll.u32 %s1129_s0, 4  ;;  %s19_s28 = int_to_ptr.hbm [resolvable:$true] %s18_s28 }
   0x3   :  { %s37_s25 = sshll.u32 %s878_s24, 4  ;;  %s879_s29 = smov 128   ;;  %s38_s25 = int_to_ptr.vmem [resolvable:$true] %s37_s25 }
   0x4   :  { %s880_s30 = smov 8   ;;  %s881_s7 = smov [#allocation3]  }
   0x5   :  { %43 = dma.hbm_to_vmem [thread:$0]  %s36_s23, 4608, %s38_s25, [#allocation7], %s879_s29, %s879_s29, %s880_s30  }
   0x6   :  { %s20_s8 = sshll.u32 %s881_s7, 4  ;;  %s882_s9 = smov 384   ;;  %s21_s8 = int_to_ptr.vmem [resolvable:$true] %s20_s8 }
   0x7   :  { %s883_s10 = smov 24   ;;  %s49_s12 = sshll.u32 %s1133_s4, 4  ;;  %s50_s12 = int_to_ptr.hbm [resolvable:$true] %s49_s12 }
   0x8   :  { %26 = dma.hbm_to_vmem [thread:$0]  %s19_s28, 768, %s21_s8, [#allocation4], %s882_s9, %s882_s9, %s883_s10  }
   0x9   :  { %s884_s13 = smov [#allocation8]  }
   0xa   :  { %s51_s14 = sshll.u32 %s884_s13, 4  ;;  %s52_s14 = int_to_ptr.vmem [resolvable:$true] %s51_s14 }
   0xb   :  { %54 = dma.hbm_to_vmem [thread:$0]  %s50_s12, 128, %s52_s14, [#allocation7]  }
   0xc   :  { %872 = dma.done.wait [#allocation4], 768  }
   0xd   :  { %873 = vsyncadd [#allocation4], 4294966528 }
   0xe   :  { %874 = dma.done.wait [#allocation7], 4736  }
   0xf   :  { %875 = vsyncadd [#allocation7], 4294962560  ;;  %v939_v0 = vld [vmem:[#allocation3 + $0x8] sm:$0xff]  ;;  %v941_v1 = vld [vmem:[#allocation3 + $0x10] sm:$0xff]  ;;  %s885_s0 = smov 90   ;;  %s886_s4 = smov 91  }
  0x10   :  { %v943_v2 = vld [vmem:[#allocation3] sm:$0xff]  ;;  %v657_v3 = vpack.i.bf16 %v941_v1, %v939_v0  ;;  %v947_v4 = vld [vmem:[#allocation3 + $0x18] sm:$0xff]  ;;  %v953_v7 = vld [vmem:[#allocation3 + $0x28] sm:$0xff]  ;;  %s887_s15 = smov 92   ;;  %s888_s16 = smov 108   ;;  %vm171_vm0 = vcmask 736256  }
  0x11   :  { %v667_v5 = vpack.i.bf16 %v947_v4, %v943_v2  ;;  %v951_v6 = vld [vmem:[#allocation3 + $0x20] sm:$0xff]  ;;  %s889_s17 = smov 109   ;;  %s890_s18 = smov 110   ;;  %vm159_vm1 = vcmask 744448   ;;  %vm147_vm2 = vcmask 752640   ;;  %vm135_vm3 = vcmask 883712  }
  0x12   :  { %658 = vrot.lane.b32.xlu0 %v657_v3, %s885_s0  ;;  %v682_v8 = vpack.i.bf16 %v953_v7, %v951_v6  ;;  %s891_s19 = smov 126   ;;  %s892_s20 = smov 127   ;;  %vm123_vm4 = vcmask 891904   ;;  %vm111_vm5 = vcmask 900096   ;;  %vm99_vm6 = vcmask 1031168  }
  0x13   :  { %668 = vrot.lane.b32.xlu1 %v667_v5, %s885_s0  ;;  %678 = vrot.lane.b32.xlu2 %v667_v5, %s886_s4  ;;  %vm87_vm7 = vcmask 1039360   ;;  %vm182_vm8 = vcmask 588800   ;;  %vm266_vm12 = vcmask 261120   ;;  %s613_s28 = sshll.u32 %s1135_s6, 4  ;;  %s614_s28 = int_to_ptr.hbm [resolvable:$true] %s613_s28 }
  0x1a   :  { %663 = vrot.lane.b32.xlu0 %v657_v3, %s886_s4 }
  0x1b   :  { %673 = vrot.lane.b32.xlu1 %v657_v3, %s887_s15  ;;  %683 = vrot.lane.b32.xlu2 %v682_v8, %s885_s0 }
  0x22   :  { %688 = vrot.lane.b32.xlu0 %v657_v3, %s888_s16 }
  0x23   :  { %693 = vrot.lane.b32.xlu1 %v667_v5, %s887_s15  ;;  %698 = vrot.lane.b32.xlu2 %v682_v8, %s886_s4 }
  0x2a   :  { %703 = vrot.lane.b32.xlu0 %v657_v3, %s889_s17 }
  0x2b   :  { %708 = vrot.lane.b32.xlu1 %v667_v5, %s888_s16  ;;  %713 = vrot.lane.b32.xlu2 %v682_v8, %s887_s15 }
  0x32   :  { %718 = vrot.lane.b32.xlu0 %v657_v3, %s890_s18 }
  0x33   :  { %723 = vrot.lane.b32.xlu1 %v667_v5, %s889_s17  ;;  %728 = vrot.lane.b32.xlu2 %v682_v8, %s888_s16 }
  0x3a   :  { %733 = vrot.lane.b32.xlu0 %v657_v3, %s891_s19 }
  0x3b   :  { %738 = vrot.lane.b32.xlu1 %v667_v5, %s890_s18  ;;  %310 = vrot.lane.b32.xlu2 %v951_v6, %s889_s17 }
  0x42   :  { %743 = vrot.lane.b32.xlu0 %v657_v3, %s892_s20 }
  0x43   :  { %748 = vrot.lane.b32.xlu1 %v667_v5, %s891_s19  ;;  %299 = vrot.lane.b32.xlu2 %v951_v6, %s890_s18 }
  0x4a   :  { %753 = vrot.lane.b32.xlu0 %v667_v5, %s892_s20 }
  0x4b   :  { %288 = vrot.lane.b32.xlu1 %v951_v6, %s891_s19  ;;  %277 = vrot.lane.b32.xlu2 %v951_v6, %s892_s20 }
  0x52   :  { %312 = vrot.lane.b32.xlu0 %v953_v7, %s889_s17 }
  0x53   :  { %301 = vrot.lane.b32.xlu1 %v953_v7, %s890_s18  ;;  %290 = vrot.lane.b32.xlu2 %v953_v7, %s891_s19 }
  0x5a   :  { %279 = vrot.lane.b32.xlu0 %v953_v7, %s892_s20 }
  0x6d   :  { %v679_v9 = vpop.permute.xlu2 %678 }
  0x6e   :  { %v681_v12 = vunpack.i.h.bf16 %v679_v9  ;;  %v680_v25 = vunpack.i.l.bf16 %v679_v9  ;;  %v893_v9 = vmov 0  }
  0x6f   :  { %757 = vset.pattern.permute.xlu1 %v893_v9  ;;  %758 = vset.pattern.permute.xlu0 %v893_v9  ;;  %v471_v9 = vld [vmem:[#allocation6 + $0xa8] sm:$0xff] }
  0x75   :  { %v965_v10 = vpop.permute.xlu2 %683 }
  0x76   :  { %v685_v14 = vunpack.i.l.bf16 %v965_v10 }
  0x7d   :  { %v967_v11 = vpop.permute.xlu2 %698 }
  0x7e   :  { %v700_v15 = vunpack.i.l.bf16 %v967_v11 }
  0x80   :  { %v347_v24 = vsel %vm159_vm1, %v681_v12, %v700_v15  ;;  %v74_v12 = vld [vmem:[%s1131_s2] sm:$0xff] }
  0x81   :  { %179 = vperm.xlu1 %757, %v74_v12   ;;  %v456_v12 = vld [vmem:[#allocation6 + $0x30] sm:$0xff] }
  0x84   :  { %v969_v13 = vpop.permute.xlu0 %658 }
  0x85   :  { %v661_v16 = vunpack.i.h.bf16 %v969_v13  ;;  %v660_v17 = vunpack.i.l.bf16 %v969_v13  ;;  %v669_v18 = vpop.permute.xlu1 %668  ;;  %v1000_v35 = vpop.permute.xlu2 %713 }
  0x86   :  { %v671_v19 = vunpack.i.h.bf16 %v669_v18  ;;  %v670_v20 = vunpack.i.l.bf16 %v669_v18  ;;  %v715_v37 = vunpack.i.l.bf16 %v1000_v35 }
  0x87   :  { %v173_v21 = vsel %vm171_vm0, %v660_v17, %v661_v16 }
  0x88   :  { %v172_v22 = vsel %vm171_vm0, %v670_v20, %v660_v17  ;;  %213 = vmatpush.msra.mxu1 %v173_v21  ;;  %v358_v23 = vsel %vm171_vm0, %v671_v19, %v685_v14 }
  0x89   :  { %193 = vmatpush.msra.mxu0 %v172_v22  ;;  %370 = vmatpush.msra.mxu3 %v358_v23 }
  0x8b   :  { %371 = vmatpush.msra.mxu3 %v347_v24 }
  0x8c   :  { %v985_v26 = vpop.permute.xlu0 %663 }
  0x8d   :  { %v666_v27 = vunpack.i.h.bf16 %v985_v26  ;;  %v665_v28 = vunpack.i.l.bf16 %v985_v26  ;;  %v989_v29 = vpop.permute.xlu1 %673  ;;  %v1014_v46 = vpop.permute.xlu2 %728  ;;  %v701_v26 = vunpack.i.h.bf16 %v967_v11 }
  0x8e   :  { %v676_v30 = vunpack.i.h.bf16 %v989_v29  ;;  %v675_v31 = vunpack.i.l.bf16 %v989_v29  ;;  %v730_v48 = vunpack.i.l.bf16 %v1014_v46  ;;  %v716_v29 = vunpack.i.h.bf16 %v1000_v35 }
  0x8f   :  { %v160_v32 = vsel %vm159_vm1, %v680_v25, %v665_v28  ;;  %v161_v33 = vsel %vm159_vm1, %v665_v28, %v666_v27 }
  0x90   :  { %194 = vmatpush.msra.mxu0 %v160_v32  ;;  %214 = vmatpush.msra.mxu1 %v161_v33  ;;  %v149_v34 = vsel %vm147_vm2, %v675_v31, %v676_v30 }
  0x92   :  { %215 = vmatpush.msra.mxu1 %v149_v34 }
  0x94   :  { %v1002_v36 = vpop.permute.xlu0 %688 }
  0x95   :  { %v691_v38 = vunpack.i.h.bf16 %v1002_v36  ;;  %v690_v39 = vunpack.i.l.bf16 %v1002_v36  ;;  %v694_v40 = vpop.permute.xlu1 %693  ;;  %v1032_v61 = vpop.permute.xlu2 %310 }
  0x96   :  { %v696_v41 = vunpack.i.h.bf16 %v694_v40  ;;  %v695_v42 = vunpack.i.l.bf16 %v694_v40 }
  0x97   :  { %v137_v43 = vsel %vm135_vm3, %v690_v39, %v691_v38 }
  0x98   :  { %v148_v44 = vsel %vm147_vm2, %v695_v42, %v675_v31  ;;  %216 = vmatpush.msra.mxu1 %v137_v43  ;;  %v336_v45 = vsel %vm147_vm2, %v696_v41, %v715_v37  ;;  %v1060_v42 = vld [vmem:[%s1130_s1] sm:$0xff] }
  0x99   :  { %195 = vmatpush.msra.mxu0 %v148_v44  ;;  %372 = vmatpush.msra.mxu3 %v336_v45 }
  0x9c   :  { %v1016_v47 = vpop.permute.xlu0 %703 }
  0x9d   :  { %v706_v49 = vunpack.i.h.bf16 %v1016_v47  ;;  %v705_v50 = vunpack.i.l.bf16 %v1016_v47  ;;  %v709_v51 = vpop.permute.xlu1 %708  ;;  %v1050_v24 = vpop.permute.xlu2 %299  ;;  %v479_v47 = vld [vmem:[#allocation6 + $0xe8] sm:$0xff] }
  0x9e   :  { %v711_v52 = vunpack.i.h.bf16 %v709_v51  ;;  %v710_v53 = vunpack.i.l.bf16 %v709_v51 }
  0x9f   :  { %v125_v54 = vsel %vm123_vm4, %v705_v50, %v706_v49 }
  0xa0   :  { %v136_v55 = vsel %vm135_vm3, %v710_v53, %v690_v39  ;;  %217 = vmatpush.msra.mxu1 %v125_v54  ;;  %v325_v56 = vsel %vm135_vm3, %v711_v52, %v730_v48  ;;  %v686_v54 = vunpack.i.h.bf16 %v965_v10  ;;  %v337_v10 = vsel %vm147_vm2, %v715_v37, %v716_v29 }
  0xa1   :  { %196 = vmatpush.msra.mxu0 %v136_v55  ;;  %373 = vmatpush.msra.mxu3 %v325_v56  ;;  %v464_v55 = vld [vmem:[#allocation6 + $0x70] sm:$0xff]  ;;  %vm602_vm2 = vcmask 1041409  }
  0xa4   :  { %v1028_v57 = vpop.permute.xlu0 %718 }
  0xa5   :  { %v721_v58 = vunpack.i.h.bf16 %v1028_v57  ;;  %v720_v59 = vunpack.i.l.bf16 %v1028_v57  ;;  %v724_v60 = vpop.permute.xlu1 %723  ;;  %v278_v45 = vpop.permute.xlu2 %277  ;;  %v477_v57 = vld [vmem:[#allocation6 + $0xd8] sm:$0xff] }
  0xa6   :  { %v726_v62 = vunpack.i.h.bf16 %v724_v60  ;;  %v725_v63 = vunpack.i.l.bf16 %v724_v60  ;;  %v475_v60 = vld [vmem:[#allocation6 + $0xc8] sm:$0xff] }
  0xa7   :  { %v113_v3 = vsel %vm111_vm5, %v720_v59, %v721_v58 }
  0xa8   :  { %v124_v5 = vsel %vm123_vm4, %v725_v63, %v705_v50  ;;  %218 = vmatpush.msra.mxu1 %v113_v3  ;;  %v314_v8 = vsel %vm123_vm4, %v726_v62, %v1032_v61  ;;  %v474_v62 = vld [vmem:[#allocation6 + $0xc0] sm:$0xff]  ;;  %v473_v63 = vld [vmem:[#allocation6 + $0xb8] sm:$0xff] }
  0xa9   :  { %197 = vmatpush.msra.mxu0 %v124_v5  ;;  %374 = vmatpush.msra.mxu3 %v314_v8  ;;  %v458_v3 = vld [vmem:[#allocation6 + $0x40] sm:$0xff]  ;;  %v472_v5 = vld [vmem:[#allocation6 + $0xb0] sm:$0xff]  ;;  %v457_v8 = vld [vmem:[#allocation6 + $0x38] sm:$0xff] }
  0xac   :  { %v1043_v17 = vpop.permute.xlu0 %733 }
  0xad   :  { %v736_v18 = vunpack.i.h.bf16 %v1043_v17  ;;  %v735_v19 = vunpack.i.l.bf16 %v1043_v17  ;;  %v739_v20 = vpop.permute.xlu1 %738  ;;  %v470_v17 = vld [vmem:[#allocation6 + $0xa0] sm:$0xff] }
  0xae   :  { %v741_v21 = vunpack.i.h.bf16 %v739_v20  ;;  %v740_v22 = vunpack.i.l.bf16 %v739_v20  ;;  %v454_v20 = vld [vmem:[#allocation6 + $0x20] sm:$0xff] }
  0xaf   :  { %v101_v23 = vsel %vm99_vm6, %v735_v19, %v736_v18 }
  0xb0   :  { %v112_v25 = vsel %vm111_vm5, %v740_v22, %v720_v59  ;;  %219 = vmatpush.msra.mxu1 %v101_v23  ;;  %v303_v28 = vsel %vm111_vm5, %v741_v21, %v1050_v24  ;;  %v476_v59 = vld [vmem:[#allocation6 + $0xd0] sm:$0xff]  ;;  %v453_v22 = vld [vmem:[#allocation6 + $0x18] sm:$0xff]  ;;  %v467_v23 = vld [vmem:[#allocation6 + $0x88] sm:$0xff] }
  0xb1   :  { %198 = vmatpush.msra.mxu0 %v112_v25  ;;  %375 = vmatpush.msra.mxu3 %v303_v28  ;;  %v468_v21 = vld [vmem:[#allocation6 + $0x90] sm:$0xff]  ;;  %v466_v25 = vld [vmem:[#allocation6 + $0x80] sm:$0xff]  ;;  %v451_v28 = vld [vmem:[#allocation6 + $0x8] sm:$0xff] }
  0xb4   :  { %v744_v31 = vpop.permute.xlu0 %743 }
  0xb5   :  { %v746_v32 = vunpack.i.h.bf16 %v744_v31  ;;  %v745_v33 = vunpack.i.l.bf16 %v744_v31  ;;  %v749_v34 = vpop.permute.xlu1 %748  ;;  %v450_v31 = vld [vmem:[#allocation6] sm:$0xff] }
  0xb6   :  { %v750_v39 = vunpack.i.l.bf16 %v749_v34  ;;  %v751_v43 = vunpack.i.h.bf16 %v749_v34 }
  0xb7   :  { %v89_v40 = vsel %vm87_vm7, %v745_v33, %v746_v32 }
  0xb8   :  { %v100_v41 = vsel %vm99_vm6, %v750_v39, %v735_v19  ;;  %220 = vmatpush.msra.mxu1 %v89_v40  ;;  %v469_v19 = vld [vmem:[#allocation6 + $0x98] sm:$0xff] }
  0xb9   :  { %199 = vmatpush.msra.mxu0 %v100_v41  ;;  %v485_v40 = vld [vmem:[#allocation6 + $0x118] sm:$0xff] }
  0xba   :  { %221 = vmatpush.msra.mxu1 %v939_v0 }
  0xbb   :  { %625 = vmatmul.msk.f32.vlgmr.msra.gmra.mxu1 %vm182_vm8, %v1060_v42 }
  0xbc   :  { %233 = vmatpush.msrb.mxu1 %v661_v16  ;;  %v754_v44 = vpop.permute.xlu0 %753  ;;  %v465_v16 = vld [vmem:[#allocation6 + $0x78] sm:$0xff] }
  0xbd   :  { %v756_v50 = vunpack.i.h.bf16 %v754_v44  ;;  %v755_v51 = vunpack.i.l.bf16 %v754_v44  ;;  %v289_v52 = vpop.permute.xlu1 %288  ;;  %493 = vmatpush.msra.mxu2 %v465_v16  ;;  %v483_v44 = vld [vmem:[#allocation6 + $0x108] sm:$0xff] }
  0xbe   :  { %234 = vmatpush.msrb.mxu1 %v666_v27  ;;  %v292_v53 = vsel %vm99_vm6, %v751_v43, %v289_v52  ;;  %v481_v27 = vld [vmem:[#allocation6 + $0xf8] sm:$0xff] }
  0xbf   :  { %376 = vmatpush.msra.mxu3 %v292_v53  ;;  %v88_v0 = vsel %vm87_vm7, %v755_v51, %v745_v33  ;;  %v281_v13 = vsel %vm87_vm7, %v756_v50, %v278_v45  ;;  %494 = vmatpush.msra.mxu2 %v464_v55  ;;  %v482_v50 = vld [vmem:[#allocation6 + $0x100] sm:$0xff] }
  0xc0   :  { %235 = vmatpush.msrb.mxu1 %v676_v30  ;;  %200 = vmatpush.msra.mxu0 %v88_v0  ;;  %v359_v30 = vsel %vm171_vm0, %v685_v14, %v686_v54  ;;  %v478_v14 = vld [vmem:[#allocation6 + $0xe0] sm:$0xff] }
  0xc1   :  { %377 = vmatpush.msra.mxu3 %v281_v13 }
  0xc2   :  { %236 = vmatpush.msrb.mxu1 %v691_v38  ;;  %201 = vmatpush.msra.mxu0 %v943_v2  ;;  %v480_v2 = vld [vmem:[#allocation6 + $0xf0] sm:$0xff]  ;;  %v348_v38 = vsel %vm159_vm1, %v700_v15, %v701_v26 }
  0xc3   :  { %378 = vmatpush.msra.mxu3 %v947_v4  ;;  %624 = vmatmul.msk.f32.vlgmr.msra.gmra.mxu0 %vm182_vm8, %v1060_v42  ;;  %v731_v4 = vunpack.i.h.bf16 %v1014_v46 }
  0xc4   :  { %237 = vmatpush.msrb.mxu1 %v706_v49  ;;  %630 = vmatmul.msk.f32.vlgmr.msra.gmra.mxu3 %vm182_vm8, %v1060_v42  ;;  %v313_v36 = vpop.permute.xlu0 %312  ;;  %v291_v49 = vpop.permute.xlu2 %290 }
  0xc5   :  { %390 = vmatpush.msrb.mxu0 %v359_v30  ;;  %516 = vmatpush.msrb.mxu3 %v481_v27  ;;  %v326_v11 = vsel %vm135_vm3, %v730_v48, %v731_v4  ;;  %v302_v15 = vpop.permute.xlu1 %301  ;;  %v315_v56 = vsel %vm123_vm4, %v1032_v61, %v313_v36  ;;  %v293_v46 = vsel %vm99_vm6, %v289_v52, %v291_v49  ;;  %v460_v61 = vld [vmem:[#allocation6 + $0x50] sm:$0xff] }
  0xc6   :  { %238 = vmatpush.msrb.mxu1 %v721_v58  ;;  %v304_v37 = vsel %vm111_vm5, %v1050_v24, %v302_v15  ;;  %v462_v58 = vld [vmem:[#allocation6 + $0x60] sm:$0xff]  ;;  %v452_v24 = vld [vmem:[#allocation6 + $0x10] sm:$0xff] }
  0xc7   :  { %391 = vmatpush.msrb.mxu0 %v348_v38  ;;  %517 = vmatpush.msrb.mxu3 %v480_v2 }
  0xc8   :  { %239 = vmatpush.msrb.mxu1 %v736_v18  ;;  %v455_v18 = vld [vmem:[#allocation6 + $0x28] sm:$0xff] }
  0xc9   :  { %392 = vmatpush.msrb.mxu0 %v337_v10  ;;  %518 = vmatpush.msrb.mxu3 %v479_v47 }
  0xca   :  { %240 = vmatpush.msrb.mxu1 %v746_v32 }
  0xcb   :  { %393 = vmatpush.msrb.mxu0 %v326_v11  ;;  %519 = vmatpush.msrb.mxu3 %v478_v14 }
  0xcc   :  { %241 = vmatpush.msrb.mxu1 %v941_v1  ;;  %v280_v35 = vpop.permute.xlu0 %279  ;;  %v463_v1 = vld [vmem:[#allocation6 + $0x68] sm:$0xff] }
  0xcd   :  { %394 = vmatpush.msrb.mxu0 %v315_v56  ;;  %626 = vmatmul.msk.f32.vlgmr.msrb.gmra.mxu1 %vm182_vm8, %v1060_v42  ;;  %v282_v48 = vsel %vm87_vm7, %v278_v45, %v280_v35 }
  0xce   :  { %410 = vmatpush.msra.mxu1 %v686_v54  ;;  %495 = vmatpush.msra.mxu2 %v463_v1 }
  0xcf   :  { %395 = vmatpush.msrb.mxu0 %v304_v37  ;;  %520 = vmatpush.msrb.mxu3 %v477_v57 }
  0xd0   :  { %411 = vmatpush.msra.mxu1 %v701_v26  ;;  %496 = vmatpush.msra.mxu2 %v462_v58 }
  0xd1   :  { %396 = vmatpush.msrb.mxu0 %v293_v46  ;;  %521 = vmatpush.msrb.mxu3 %v476_v59 }
  0xd2   :  { %412 = vmatpush.msra.mxu1 %v716_v29 }
  0xd3   :  { %397 = vmatpush.msrb.mxu0 %v282_v48  ;;  %522 = vmatpush.msrb.mxu3 %v475_v60 }
  0xd4   :  { %413 = vmatpush.msra.mxu1 %v731_v4 }
  0xd5   :  { %398 = vmatpush.msrb.mxu0 %v951_v6  ;;  %v461_v6 = vld [vmem:[#allocation6 + $0x58] sm:$0xff]  ;;  %523 = vmatpush.msrb.mxu3 %v474_v62 }
  0xd6   :  { %631 = vmatmul.msk.f32.vlgmr.msrb.gmra.mxu0 %vm182_vm8, %v1060_v42  ;;  %414 = vmatpush.msra.mxu1 %v313_v36 }
  0xd7   :  { %497 = vmatpush.msra.mxu2 %v461_v6  ;;  %524 = vmatpush.msrb.mxu3 %v473_v63 }
  0xd8   :  { %415 = vmatpush.msra.mxu1 %v302_v15  ;;  %551 = vmatpush.msra.mxu0 %v485_v40 }
  0xd9   :  { %498 = vmatpush.msra.mxu2 %v460_v61  ;;  %525 = vmatpush.msrb.mxu3 %v472_v5 }
  0xda   :  { %416 = vmatpush.msra.mxu1 %v291_v49 }
  0xdb   :  { %526 = vmatpush.msrb.mxu3 %v471_v9 }
  0xdc   :  { %417 = vmatpush.msra.mxu1 %v280_v35 }
  0xdd   :  { %527 = vmatpush.msrb.mxu3 %v470_v17  ;;  %v562_v17 = vld [vmem:[#allocation8] sm:$0xff] }
  0xde   :  { %418 = vmatpush.msra.mxu1 %v953_v7  ;;  %v459_v7 = vld [vmem:[#allocation6 + $0x48] sm:$0xff] }
  0xdf   :  { %632 = vmatmul.msk.f32.vlgmr.msra.gmra.mxu1 %vm182_vm8, %v1060_v42  ;;  %499 = vmatpush.msra.mxu2 %v459_v7  ;;  %v484_v42 = vld [vmem:[#allocation6 + $0x110] sm:$0xff] }
  0xe0   :  { %528 = vmatpush.msrb.mxu3 %v469_v19  ;;  %552 = vmatpush.msra.mxu0 %v484_v42 }
  0xe1   :  { %500 = vmatpush.msra.mxu2 %v458_v3 }
  0xe2   :  { %529 = vmatpush.msrb.mxu3 %v468_v21  ;;  %553 = vmatpush.msra.mxu0 %v483_v44 }
  0xe3   :  { %501 = vmatpush.msra.mxu2 %v457_v8 }
  0xe4   :  { %530 = vmatpush.msrb.mxu3 %v467_v23  ;;  %554 = vmatpush.msra.mxu0 %v482_v50 }
  0xe5   :  { %502 = vmatpush.msra.mxu2 %v456_v12 }
  0xe6   :  { %531 = vmatpush.msrb.mxu3 %v466_v25 }
  0xe7   :  { %503 = vmatpush.msra.mxu2 %v455_v18 }
  0xe9   :  { %504 = vmatpush.msra.mxu2 %v454_v20 }
  0xeb   :  { %505 = vmatpush.msra.mxu2 %v453_v22 }
  0xed   :  { %506 = vmatpush.msra.mxu2 %v452_v24 }
  0xef   :  { %507 = vmatpush.msra.mxu2 %v451_v28 }
  0xf1   :  { %508 = vmatpush.msra.mxu2 %v450_v31 }
  0xf3   :  { %v180_v32 = vpop.permute.xlu1 %179 }
 0x138   :  { %v223_v33 = vpop.f32.mrf.mxu1 }
 0x139   :  { %v224_v34 = vadd.f32 %v223_v33, %v180_v32 }
 0x13b   :  { %v250_v39 = vmin.f32 %v224_v34, 0.0  ;;  %vm247_vm9 = vcmp.gt.f32.partialorder %v224_v34, 0.0 }
 0x13d   :  { %v254_v41 = vmul.f32 1.442695, %v250_v39 }
 0x13f   :  { %760 = vpow2.f32 %v254_v41 }
 0x140   :  { %v203_v43 = vpop.f32.mrf.mxu0 }
 0x141   :  { %v204_v45 = vadd.f32 %v203_v43, %v180_v32 }
 0x143   :  { %v249_v51 = vmin.f32 %v204_v45, 0.0  ;;  %vm246_vm10 = vcmp.gt.f32.partialorder %v204_v45, 0.0 }
 0x145   :  { %v252_v52 = vmul.f32 1.442695, %v249_v51  ;;  %v761_v53 = vpop.eup %760 }
 0x146   :  { %v628_v0 = vadd.f32 -1.0, %v761_v53 }
 0x147   :  { %762 = vpow2.f32 %v252_v52  ;;  %v380_v13 = vpop.f32.mrf.mxu3 }
 0x148   :  { %v381_v16 = vadd.f32 %v380_v13, %v180_v32  ;;  %v262_v54 = vsel %vm247_vm9, %v224_v34, %v628_v0  ;;  %v759_v34 = vld [vmem:[%s1134_s5] ss:$0 sm:$0xff]  ;;  %s894_s5 = smov [#allocation9]  }
 0x149   :  { %532 = vmatmul.f32.vlgmr.msrb.gmra.mxu3 %v262_v54  ;;  %s611_s25 = sshll.u32 %s894_s5, 4  ;;  %s612_s25 = int_to_ptr.vmem [resolvable:$true] %s611_s25 }
 0x14a   :  { %v426_v55 = vmin.f32 %v381_v16, 0.0  ;;  %v243_v26 = vpop.f32.mrf.mxu1  ;;  %vm423_vm11 = vcmp.gt.f32.partialorder %v381_v16, 0.0 }
 0x14b   :  { %v244_v27 = vadd.f32 %v243_v26, %v180_v32 }
 0x14c   :  { %v429_v29 = vmul.f32 1.442695, %v426_v55 }
 0x14d   :  { %v763_v30 = vpop.eup %762  ;;  %v251_v2 = vmin.f32 %v244_v27, 0.0  ;;  %vm248_vm13 = vcmp.gt.f32.partialorder %v244_v27, 0.0 }
 0x14e   :  { %v627_v36 = vadd.f32 -1.0, %v763_v30  ;;  %764 = vpow2.f32 %v429_v29 }
 0x14f   :  { %v256_v4 = vmul.f32 1.442695, %v251_v2 }
 0x150   :  { %v261_v38 = vsel %vm246_vm10, %v204_v45, %v627_v36 }
 0x151   :  { %766 = vpow2.f32 %v256_v4  ;;  %509 = vmatmul.f32.vlgmr.msra.gmra.mxu2 %v261_v38 }
 0x153   :  { %v400_v47 = vpop.f32.mrf.mxu0 }
 0x154   :  { %v765_v10 = vpop.eup %764  ;;  %v401_v14 = vadd.f32 %v400_v47, %v180_v32 }
 0x155   :  { %v633_v11 = vadd.f32 -1.0, %v765_v10 }
 0x156   :  { %v427_v49 = vmin.f32 %v401_v14, 0.0  ;;  %vm424_vm14 = vcmp.gt.f32.partialorder %v401_v14, 0.0 }
 0x157   :  { %v767_v15 = vpop.eup %766  ;;  %v438_v56 = vsel %vm423_vm11, %v381_v16, %v633_v11 }
 0x158   :  { %v629_v35 = vadd.f32 -1.0, %v767_v15  ;;  %v431_v37 = vmul.f32 1.442695, %v427_v49 }
 0x159   :  { %512 = vmatmul.f32.gmra.mxu2 %v438_v56 }
 0x15a   :  { %v263_v46 = vsel %vm248_vm13, %v244_v27, %v629_v35  ;;  %768 = vpow2.f32 %v431_v37 }
 0x15b   :  { %267 = vst.msk [vmem:[#allocation2 + $0x10] sm:$0xff] %vm266_vm12, %v263_v46 }
 0x15c   :  { %v420_v48 = vpop.f32.mrf.mxu1 }
 0x15d   :  { %v421_v1 = vadd.f32 %v420_v48, %v180_v32 }
 0x15f   :  { %v428_v57 = vmin.f32 %v421_v1, 0.0  ;;  %vm425_vm15 = vcmp.gt.f32.partialorder %v421_v1, 0.0 }
 0x160   :  { %v769_v58 = vpop.eup %768 }
 0x161   :  { %v634_v59 = vadd.f32 -1.0, %v769_v58  ;;  %v433_v6 = vmul.f32 1.442695, %v428_v57 }
 0x162   :  { %v446_v60 = vld [vmem:[#allocation2 + $0x10] sm:$0xff] }
 0x163   :  { %v439_v61 = vsel %vm424_vm14, %v401_v14, %v634_v59  ;;  %770 = vpow2.f32 %v433_v6  ;;  %636 = vmatmul.msk.f32.vlgmr.msra.gmra.mxu0 %vm266_vm12, %v446_v60 }
 0x164   :  { %535 = vmatmul.f32.gmra.mxu3 %v439_v61 }
 0x169   :  { %v771_v62 = vpop.eup %770 }
 0x16a   :  { %v635_v7 = vadd.f32 -1.0, %v771_v62 }
 0x16c   :  { %v440_v63 = vsel %vm425_vm15, %v421_v1, %v635_v7 }
 0x16d   :  { %443 = vst.msk [vmem:[#allocation2 + $0x28] sm:$0xff] %vm266_vm12, %v440_v63 }
 0x174   :  { %v449_v3 = vld [vmem:[#allocation2 + $0x28] sm:$0xff] }
 0x175   :  { %637 = vmatmul.msk.f32.gmra.mxu0 %vm266_vm12, %v449_v3 }
 0x1cc   :  { %v533_v8 = vpop.f32.mrf.mxu3 }
 0x1d4   :  { %v510_v5 = vpop.f32.mrf.mxu2 }
 0x1d5   :  { %v534_v9 = vadd.f32 %v533_v8, %v510_v5 }
 0x1dc   :  { %v513_v28 = vpop.f32.mrf.mxu2 }
 0x1e0   :  { %v556_v12 = vpop.f32.mrf.mxu0 }
 0x1e1   :  { %v557_v18 = vadd.f32 %v556_v12, %v534_v9 }
 0x1e3   :  { %v563_v19 = vmul.f32 %v562_v17, %v557_v18 }
 0x1e5   :  { %v565_v20 = vrot.slane %v563_v19, 4 }
 0x1e7   :  { %v566_v21 = vadd.f32 %v565_v20, %v563_v19  ;;  %v536_v24 = vpop.f32.mrf.mxu3 }
 0x1e8   :  { %v537_v31 = vadd.f32 %v536_v24, %v513_v28 }
 0x1e9   :  { %v567_v22 = vrot.slane %v566_v21, 2 }
 0x1eb   :  { %v568_v23 = vadd.f32 %v567_v22, %v566_v21 }
 0x1ed   :  { %v569_v25 = vrot.slane %v568_v23, 1 }
 0x1ef   :  { %v570_v33 = vadd.f32 %v569_v25, %v568_v23 }
 0x1f1   :  { %v581_v41 = vadd.f32 %v759_v34, %v570_v33 }
 0x1f2   :  { %v559_v32 = vpop.f32.mrf.mxu0 }
 0x1f3   :  { %v560_v39 = vadd.f32 %v559_v32, %v537_v31  ;;  %v583_v44 = vadd.f32 0.5, %v581_v41 }
 0x1f5   :  { %v564_v40 = vmul.f32 %v562_v17, %v560_v39  ;;  %v587_v51 = vmin.f32 %v583_v44, 0.0  ;;  %vm585_vm0 = vcmp.gt.f32.partialorder %v583_v44, 0.0 }
 0x1f7   :  { %v571_v42 = vrot.slane %v564_v40, 4  ;;  %v589_v13 = vmul.f32 1.442695, %v587_v51 }
 0x1f9   :  { %v572_v43 = vadd.f32 %v571_v42, %v564_v40  ;;  %772 = vpow2.f32 %v589_v13 }
 0x1fb   :  { %v573_v45 = vrot.slane %v572_v43, 2 }
 0x1fd   :  { %v574_v50 = vadd.f32 %v573_v45, %v572_v43 }
 0x1ff   :  { %v575_v52 = vrot.slane %v574_v50, 1  ;;  %v773_v26 = vpop.eup %772 }
 0x200   :  { %v638_v27 = vadd.f32 -1.0, %v773_v26 }
 0x201   :  { %v576_v53 = vadd.f32 %v575_v52, %v574_v50 }
 0x202   :  { %v595_v2 = vsel %vm585_vm0, %v583_v44, %v638_v27 }
 0x203   :  { %v582_v0 = vadd.f32 %v759_v34, %v576_v53  ;;  %v597_v38 = vadd.f32 1.0, %v595_v2 }
 0x205   :  { %v584_v16 = vadd.f32 0.5, %v582_v0 }
 0x207   :  { %v588_v54 = vmin.f32 %v584_v16, 0.0  ;;  %vm586_vm1 = vcmp.gt.f32.partialorder %v584_v16, 0.0 }
 0x209   :  { %v591_v55 = vmul.f32 1.442695, %v588_v54 }
 0x20b   :  { %774 = vpow2.f32 %v591_v55 }
 0x211   :  { %v775_v29 = vpop.eup %774 }
 0x212   :  { %v639_v30 = vadd.f32 -1.0, %v775_v29 }
 0x214   :  { %v596_v36 = vsel %vm586_vm1, %v584_v16, %v639_v30 }
 0x215   :  { %v598_v4 = vadd.f32 1.0, %v596_v36 }
 0x217   :  { %v601_v47 = vrot.slane %v598_v4, 7 }
 0x219   :  { %v603_v10 = vsel %vm602_vm2, %v601_v47, %v597_v38 }
 0x21a   :  { %605 = vst [vmem:[#allocation9] sm:$0x3] %v603_v10 }
 0x21b   :  { %616 = dma.vmem_to_hbm [thread:$0]  %s612_s25, 32, %s614_s28, [#allocation5]  }
 0x21c   :  { %876 = dma.done.wait [#allocation5], 32  }
 0x21d   :  { %877 = vsyncadd [#allocation5], 4294967264 }
 0x21e   :  { %621 = vsyncpa [#allocation4], 1 }
 0x21f   :  { %622 = vsyncpa [#allocation7], 1 }
 0x220   :  { %623 = vsyncpa [#allocation5], 1 }

</bundles_post_ra>
